<compile_context>
chip_gen: v6e
topology: v6e:2x2x1
jax: 0.10.0
libtpu: 0.0.40
codegen_flags: <defaults>
</compile_context>

<pallas_src>
import functools

import jax
import jax.numpy as jnp
from jax.experimental import pallas as pl
from jax.experimental.pallas import tpu as pltpu


def _round_up(x, m):
    return ((x + m - 1) // m) * m


# -----------------------------------------------------------------------------
# Main fused kernel: one HBM read + one HBM write of x per element.
# -----------------------------------------------------------------------------
def _se_fused_kernel(x_ref, w1_ref, w2_ref, o_ref, *, inv_hw):
    """x_ref/o_ref: (Bt, C, HW) -- NCHW with H*W flattened into the lane dim.

    w1_ref: (C, Crp)  = fc1.weight.T zero-padded to Crp columns.
    w2_ref: (Crp, C)  = fc2.weight.T zero-padded to Crp rows.
    """
    # Squeeze: global average pool, accumulated in f32.  The cast fuses into
    # the reduce -- no whole-tile f32 copy is materialized in VMEM.
    y = jnp.sum(x_ref[...], axis=2, dtype=jnp.float32) * inv_hw       # (Bt, C)

    # Excitation: Linear -> ReLU -> Linear -> Sigmoid, all in f32.
    h = jnp.maximum(
        jnp.dot(y, w1_ref[...], preferred_element_type=jnp.float32), 0.0)
    s = jax.nn.sigmoid(
        jnp.dot(h, w2_ref[...], preferred_element_type=jnp.float32))   # (Bt, C)

    # Scale: re-read the ref and multiply in the storage dtype; only the tiny
    # (Bt, C) gate is cast.
    x = x_ref[...]
    o_ref[...] = (x * s.astype(x.dtype)[:, :, None]).astype(o_ref.dtype)


# -----------------------------------------------------------------------------
# Channel-tiled fallback (when one batch element does not fit the VMEM budget).
# -----------------------------------------------------------------------------
def _pool_kernel(x_ref, y_ref, *, inv_hw):
    # x_ref: (Btp, Ct, HW); y_ref: (1, 1, Btp, Ct) f32
    y_ref[0, 0] = jnp.sum(x_ref[...], axis=2, dtype=jnp.float32) * inv_hw


def _gate_kernel(y_ref, w1_ref, w2_ref, s_ref):
    h = jnp.maximum(
        jnp.dot(y_ref[...], w1_ref[...], preferred_element_type=jnp.float32),
        0.0)
    s_ref[...] = jax.nn.sigmoid(
        jnp.dot(h, w2_ref[...], preferred_element_type=jnp.float32))


def _scale_kernel(x_ref, s_ref, o_ref):
    x = x_ref[...]
    s = s_ref[0, 0].astype(x.dtype)
    o_ref[...] = (x * s[:, :, None]).astype(o_ref.dtype)


# -----------------------------------------------------------------------------
# Wrapper
# -----------------------------------------------------------------------------
def _vmem_config():
    """Generation-aware (block budget, scoped vmem cap, min grid steps)."""
    try:
        cap = pltpu.get_tpu_info().vmem_capacity_bytes
    except Exception:
        cap = 64 * 1024 * 1024  # conservative (v7x-like) if query unavailable
    if cap >= 96 * 1024 * 1024:
        # v5e / v6e: 128 MiB VMEM -- large blocks are free bandwidth.
        return 80 * 1024 * 1024, 100 * 1024 * 1024, 2
    # v7x: 64 MiB per TC, 2 TCs/chip -> >= 4 grid steps, ~48 MiB scoped cap.
    return 24 * 1024 * 1024, 48 * 1024 * 1024, 4


def se_layer(x_nchw, w1, w2, *, out_dtype=None, block_bytes_budget=None):
    """SE forward.

    x_nchw: (B, C, H, W).
    w1: (C, Cr)  = fc1.weight.T (bias-free).
    w2: (Cr, C)  = fc2.weight.T (bias-free).
    out_dtype: optional output-only downcast (done inside the kernel on store).
    """
    B, C, H, W = x_nchw.shape
    HW = H * W
    in_dtype = jnp.dtype(x_nchw.dtype)
    out_dtype = jnp.dtype(out_dtype) if out_dtype is not None else in_dtype
    elem_in, elem_out = in_dtype.itemsize, out_dtype.itemsize
    inv_hw = 1.0 / HW

    budget, vmem_cap, min_steps = _vmem_config()
    if block_bytes_budget is not None:
        budget = int(block_bytes_budget)

    # Zero-pad the bottleneck dim to a multiple of 8 (sublane-dense vregs).
    Cr = w1.shape[1]
    Crp = max(8, _round_up(Cr, 8))
    w1p = jnp.zeros((C, Crp), jnp.float32).at[:, :Cr].set(w1.astype(jnp.float32))
    w2p = jnp.zeros((Crp, C), jnp.float32).at[:Cr, :].set(w2.astype(jnp.float32))
    w_bytes = (w1p.size + w2p.size) * 4

    # Flatten spatial dims into the lane axis: pure reshape, no HBM transpose.
    x = x_nchw.reshape(B, C, HW)

    cost = pl.CostEstimate(
        flops=2 * B * C * HW + 4 * B * C * Crp,
        transcendentals=B * C,
        bytes_accessed=B * C * HW * (elem_in + elem_out) + w_bytes,
    )

    # Per-batch-element footprint: double-buffered input + output blocks.
    per_b = C * HW * 2 * (elem_in + elem_out)

    bt = 0
    eff_min_steps = min(min_steps, B)
    for d in range(1, B + 1):
        if B % d != 0 or d * per_b > budget:
            continue
        if B // d >= eff_min_steps:
            bt = d                       # largest divisor meeting both constraints
    if bt == 0:
        for d in range(1, B + 1):        # relax the min-steps constraint
            if B % d == 0 and d * per_b <= budget:
                bt = d

    if bt > 0:
        # ---------------- Fully fused path ----------------
        vmem_limit = int(min(max(bt * per_b + 2 * w_bytes + (2 << 20), 4 << 20),
                             vmem_cap))
        out = pl.pallas_call(
            functools.partial(_se_fused_kernel, inv_hw=inv_hw),
            out_shape=jax.ShapeDtypeStruct((B, C, HW), out_dtype),
            grid_spec=pltpu.PrefetchScalarGridSpec(
                num_scalar_prefetch=0,
                grid=(B // bt,),
                in_specs=[
                    pl.BlockSpec((bt, C, HW), lambda b: (b, 0, 0)),
                    pl.BlockSpec((C, Crp), lambda b: (0, 0)),
                    pl.BlockSpec((Crp, C), lambda b: (0, 0)),
                ],
                out_specs=pl.BlockSpec((bt, C, HW), lambda b: (b, 0, 0)),
            ),
            compiler_params=pltpu.CompilerParams(
                dimension_semantics=("parallel",),
                vmem_limit_bytes=vmem_limit,
            ),
            cost_estimate=cost,
        )(x, w1p, w2p)
        return out.reshape(B, C, H, W)

    # ---------------- Channel-tiled two-pass fallback ----------------
    # ~1.5x the HBM traffic of the fused path (2R + 1W) but bounded VMEM.
    # TODO(synk): add an HW-tiled variant for the case where even a single
    # 8-channel slab (8 * HW elements) exceeds the VMEM budget.
    tc_cands = [d for d in range(1, C + 1)
                if C % d == 0 and (d % 8 == 0 or d == C)]
    per_tc = HW * 2 * (elem_in + elem_out)      # per-channel footprint (scale pass)
    tc = tc_cands[0]
    for d in tc_cands:
        if d * per_tc <= budget:
            tc = d
    btp = 1
    nb, nc = B // btp, C // tc

    vmem_limit = int(min(max(btp * tc * per_tc + 2 * w_bytes + (2 << 20), 4 << 20),
                         vmem_cap))
    cparams = pltpu.CompilerParams(
        dimension_semantics=("parallel", "parallel"),
        vmem_limit_bytes=vmem_limit,
    )

    # Pass 1: pooled means per (batch, channel-tile) block.
    y4 = pl.pallas_call(
        functools.partial(_pool_kernel, inv_hw=inv_hw),
        out_shape=jax.ShapeDtypeStruct((nb, nc, btp, tc), jnp.float32),
        grid_spec=pltpu.PrefetchScalarGridSpec(
            num_scalar_prefetch=0,
            grid=(nb, nc),
            in_specs=[pl.BlockSpec((btp, tc, HW), lambda i, j: (i, j, 0))],
            out_specs=pl.BlockSpec((1, 1, btp, tc), lambda i, j: (i, j, 0, 0)),
        ),
        compiler_params=cparams,
    )(x)
    y = y4.transpose(0, 2, 1, 3).reshape(B, C)          # tiny (B, C) array

    # Pass 2: the gate MLP on the tiny pooled array (whole arrays in VMEM).
    s = pl.pallas_call(
        _gate_kernel,
        out_shape=jax.ShapeDtypeStruct((B, C), jnp.float32),
    )(y, w1p, w2p)
    s4 = s.reshape(nb, btp, nc, tc).transpose(0, 2, 1, 3)

    # Pass 3: scale x by the per-channel gate.
    out = pl.pallas_call(
        _scale_kernel,
        out_shape=jax.ShapeDtypeStruct((B, C, HW), out_dtype),
        grid_spec=pltpu.PrefetchScalarGridSpec(
            num_scalar_prefetch=0,
            grid=(nb, nc),
            in_specs=[
                pl.BlockSpec((btp, tc, HW), lambda i, j: (i, j, 0)),
                pl.BlockSpec((1, 1, btp, tc), lambda i, j: (i, j, 0, 0)),
            ],
            out_specs=pl.BlockSpec((btp, tc, HW), lambda i, j: (i, j, 0)),
        ),
        compiler_params=cparams,
        cost_estimate=cost,
    )(x, s4)
    return out.reshape(B, C, H, W)


def se_layer_ref(x, w1, w2):
    """Pure-JAX reference mirroring the PyTorch module."""
    y = jnp.mean(x.astype(jnp.float32), axis=(2, 3))       # (B, C)
    h = jnp.maximum(y @ w1.astype(jnp.float32), 0.0)       # (B, Cr)
    s = jax.nn.sigmoid(h @ w2.astype(jnp.float32))         # (B, C)
    return x.astype(jnp.float32) * s[:, :, None, None]


if __name__ == "__main__":
    key = jax.random.PRNGKey(0)
    reduction = 16

    # Test 1: NCHW shape with lane-dense HW (=256), f32.
    B, C, H, W = 2, 32, 16, 16
    Cr = C // reduction                                    # = 2
    kx, k1, k2 = jax.random.split(key, 3)
    x = jax.random.normal(kx, (B, C, H, W), dtype=jnp.float32)
    # nn.Linear(channel, channel//r, bias=False).weight has shape (Cr, C);
    # we pass its transpose so the kernel computes y @ w1 directly.
    w1 = jax.random.normal(k1, (C, Cr), dtype=jnp.float32) * 0.1
    w2 = jax.random.normal(k2, (Cr, C), dtype=jnp.float32) * 0.1

    out = se_layer(x, w1, w2)
    jax.block_until_ready(out)
    ref = se_layer_ref(x, w1, w2)
    assert out.shape == (B, C, H, W)
    assert jnp.allclose(out, ref, atol=1e-5, rtol=1e-5)

    # Test 2: bf16 input (caller already holds bf16); gate applied in bf16.
    x_bf16 = x.astype(jnp.bfloat16)
    out_bf16 = se_layer(x_bf16, w1, w2)
    jax.block_until_ready(out_bf16)
    ref_bf16 = se_layer_ref(x_bf16.astype(jnp.float32), w1, w2)
    assert out_bf16.dtype == jnp.bfloat16
    assert jnp.allclose(out_bf16.astype(jnp.float32), ref_bf16,
                        atol=5e-2, rtol=5e-2)

    # Test 3: HW not lane-dense (7x7 = 49) -- masked stores, still one pass.
    B2, C2, H2, W2 = 2, 128, 7, 7
    Cr2 = C2 // reduction                                  # = 8
    kx2, k12, k22 = jax.random.split(jax.random.PRNGKey(1), 3)
    x2 = jax.random.normal(kx2, (B2, C2, H2, W2), dtype=jnp.float32)
    w12 = jax.random.normal(k12, (C2, Cr2), dtype=jnp.float32) * 0.1
    w22 = jax.random.normal(k22, (Cr2, C2), dtype=jnp.float32) * 0.1
    out2 = se_layer(x2, w12, w22)
    jax.block_until_ready(out2)
    ref2 = se_layer_ref(x2, w12, w22)
    assert jnp.allclose(out2, ref2, atol=1e-5, rtol=1e-5)

    # Test 4: force the channel-tiled two-pass fallback with a tiny budget.
    out_fb = se_layer(x, w1, w2, block_bytes_budget=64 * 1024)
    jax.block_until_ready(out_fb)
    assert jnp.allclose(out_fb, ref, atol=1e-5, rtol=1e-5)

    print("KERNEL_OK")
</pallas_src>

<mosaic_0001>
module attributes {stable_mosaic.version = 11 : i64} {
  func.func @_se_fused_kernel(%arg0: i32, %arg1: memref<1x32x256xf32, #tpu.memory_space<vmem>>, %arg2: memref<32x8xf32, #tpu.memory_space<vmem>>, %arg3: memref<8x32xf32, #tpu.memory_space<vmem>>, %arg4: memref<1x32x256xf32, #tpu.memory_space<vmem>>) attributes {dimension_semantics = [#tpu.dimension_semantics<parallel>], iteration_bounds = array<i64: 2>, scalar_prefetch = 0 : i64, scratch_operands = 0 : i64, tpu.core_type = #tpu.core_type<tc>, window_params = [{transform_indices = @transform_0, window_bounds = array<i64: 1, 32, 256>}, {pipeline_mode = #tpu.pipeline_mode<synchronous>, transform_indices = @transform_1, window_bounds = array<i64: 32, 8>}, {pipeline_mode = #tpu.pipeline_mode<synchronous>, transform_indices = @transform_2, window_bounds = array<i64: 8, 32>}, {transform_indices = @transform_3, window_bounds = array<i64: 1, 32, 256>}]} {
    %c0 = arith.constant 0 : index
    %c0_0 = arith.constant 0 : index
    %c0_1 = arith.constant 0 : index
    %0 = vector.load %arg1[%c0, %c0_0, %c0_1] : memref<1x32x256xf32, #tpu.memory_space<vmem>>, vector<1x32x256xf32>
    %cst = arith.constant dense<0.000000e+00> : vector<1x32xf32>
    %1 = vector.multi_reduction <add>, %0, %cst [2] : vector<1x32x256xf32> to vector<1x32xf32>
    %cst_2 = arith.constant 3.906250e-03 : f32
    %2 = vector.broadcast %cst_2 : f32 to vector<1x32xf32>
    %3 = arith.mulf %1, %2 : vector<1x32xf32>
    %c0_3 = arith.constant 0 : index
    %c0_4 = arith.constant 0 : index
    %4 = vector.load %arg2[%c0_3, %c0_4] : memref<32x8xf32, #tpu.memory_space<vmem>>, vector<32x8xf32>
    %cst_5 = arith.constant dense<0.000000e+00> : vector<1x8xf32>
    %5 = tpu.matmul %3, %4, %cst_5 {dimension_numbers = #tpu.dot_dimension_numbers<[1], [0], [0], [1], [0, 0, 1, 1], [], []>} : vector<1x32xf32>, vector<32x8xf32>, vector<1x8xf32> -> vector<1x8xf32>
    %cst_6 = arith.constant 0.000000e+00 : f32
    %6 = vector.broadcast %cst_6 : f32 to vector<1x8xf32>
    %7 = arith.maximumf %5, %6 : vector<1x8xf32>
    %c0_7 = arith.constant 0 : index
    %c0_8 = arith.constant 0 : index
    %8 = vector.load %arg3[%c0_7, %c0_8] : memref<8x32xf32, #tpu.memory_space<vmem>>, vector<8x32xf32>
    %cst_9 = arith.constant dense<0.000000e+00> : vector<1x32xf32>
    %9 = tpu.matmul %7, %8, %cst_9 {dimension_numbers = #tpu.dot_dimension_numbers<[1], [0], [0], [1], [0, 0, 1, 1], [], []>} : vector<1x8xf32>, vector<8x32xf32>, vector<1x32xf32> -> vector<1x32xf32>
    %10 = arith.negf %9 : vector<1x32xf32>
    %11 = math.exp %10 : vector<1x32xf32>
    %cst_10 = arith.constant 1.000000e+00 : f32
    %12 = vector.broadcast %cst_10 : f32 to vector<1x32xf32>
    %13 = arith.addf %12, %11 : vector<1x32xf32>
    %14 = arith.divf %12, %13 : vector<1x32xf32>
    %c0_11 = arith.constant 0 : index
    %c0_12 = arith.constant 0 : index
    %c0_13 = arith.constant 0 : index
    %15 = vector.load %arg1[%c0_11, %c0_12, %c0_13] : memref<1x32x256xf32, #tpu.memory_space<vmem>>, vector<1x32x256xf32>
    %16 = vector.shape_cast %14 : vector<1x32xf32> to vector<1x32x1xf32>
    %17 = vector.broadcast %16 : vector<1x32x1xf32> to vector<1x32x256xf32>
    %18 = arith.mulf %15, %17 : vector<1x32x256xf32>
    %c0_14 = arith.constant 0 : index
    %c0_15 = arith.constant 0 : index
    %c0_16 = arith.constant 0 : index
    %19 = vector.load %arg4[%c0_14, %c0_15, %c0_16] : memref<1x32x256xf32, #tpu.memory_space<vmem>>, vector<1x32x256xf32>
    tpu.vector_store %arg4[%c0_14, %c0_15, %c0_16], %18 {strides = array<i32>} : memref<1x32x256xf32, #tpu.memory_space<vmem>>, vector<1x32x256xf32>,
    return
  }
  func.func @transform_0(%arg0: i32) -> (i32, i32, i32) {
    %c0_i32 = arith.constant 0 : i32
    %c0_i32_0 = arith.constant 0 : i32
    %c0_i32_1 = arith.constant 0 : i32
    return %arg0, %c0_i32, %c0_i32_0 : i32, i32, i32
  }
  func.func @transform_1(%arg0: i32) -> (i32, i32) {
    %c0_i32 = arith.constant 0 : i32
    %c0_i32_0 = arith.constant 0 : i32
    %c0_i32_1 = arith.constant 0 : i32
    return %c0_i32, %c0_i32_0 : i32, i32
  }
  func.func @transform_2(%arg0: i32) -> (i32, i32) {
    %c0_i32 = arith.constant 0 : i32
    %c0_i32_0 = arith.constant 0 : i32
    %c0_i32_1 = arith.constant 0 : i32
    return %c0_i32, %c0_i32_0 : i32, i32
  }
  func.func @transform_3(%arg0: i32) -> (i32, i32, i32) {
    %c0_i32 = arith.constant 0 : i32
    %c0_i32_0 = arith.constant 0 : i32
    %c0_i32_1 = arith.constant 0 : i32
    return %arg0, %c0_i32, %c0_i32_0 : i32, i32, i32
  }
}

</mosaic_0001>

<bundles_post_ra>
// kernel: tpu_custom_call.1
= control target key start
LH: loop header
LB: loop body
LE: loop exit
PB: predicated region body
PF: predicated region fallthrough
CT: control target
= control target key end

     0   :  { %8 = vsyncpa [#allocation3], 0  ;;  %s950_s0 = inlined_call_operand.hbm [shape: f32[2,32,256], index: 0, kind: input, shape index: {}]   ;;  %s951_s1 = inlined_call_operand.vmem [shape: f32[32,8], index: 1, kind: input, shape index: {}]   ;;  %s952_s2 = inlined_call_operand.vmem [shape: f32[8,32], index: 2, kind: input, shape index: {}]   ;;  %s953_s3 = inlined_call_operand.hbm [shape: f32[2,32,256], index: 3, kind: output, shape index: {}]  }
   0x1   :  { %10 = vsyncpa [#allocation3 + $0x1], 0 }
   0x2   :  { %11 = vsyncpa [#allocation4], 0 }
   0x3   :  { %13 = vsyncpa [#allocation4 + $0x1], 0  ;;  %s745_s12 = smov 0   ;;  %s747_s13 = smov 0  }
   0x4   :  { %s749_s14 = smov 0   ;;  %s751_s15 = smov 0  }
   0x5 LB: > { %s766_s16 = sadd.s32 4294967295, %s715_s15   ;;  %s525_s17 = sadd.s32 4294967294, %s715_s15   ;;  %s715_s15 = sphi %s751_s15, %s968_s15   ;;  %s711_s14 = sphi %s749_s14, %s967_s14   ;;  %s707_s13 = sphi %s747_s13, %s966_s13   ;;  %s703_s12 = sphi %s745_s12, %s965_s12  }
   0x6   : > { %s770_s18 = sadd.s32 1, %s715_s15   ;;  %s26_s19 = sadd.s32 1, %s711_s14 }
   0x7   : > { %s23_s20 = ssub.s32 %s715_s15, %s770_s18  ;;  %p33_p0 = scmp.ne.s32.totalorder %s711_s14, %s707_s13 }
   0x8   : > { %p24_p1 = scmp.eq.s32.totalorder %s23_s20, 0  ;;  %p34_p2 = scmp.eq.s32.totalorder %s715_s15, 0 }
   0x9   : > { %p39_p3 = scmp.ne.s32.totalorder %s707_s13, %s703_s12  ;;  %p40_p4 = scmp.eq.s32.totalorder %s766_s16, 0 }
   0xa   : > { %s782_s21 = scalar_select %p24_p1, %s711_s14, %s26_s19  }
   0xb   : > { %p784_p5 = por %p34_p2, %p33_p0  ;;  %p788_p6 = por %p40_p4, %p39_p3 }
   0xc   : > { %p105_p7 = scmp.eq.s32.totalorder %s766_s16, 1  ;;  %p111_p8 = scmp.eq.s32.totalorder %s525_s17, 1 }
   0xd   : > { %s957_s23 = scalar_select %p788_p6, 1, 0 }
   0xe   : > { %p579_p10 = scmp.lt.s32.totalorder %s715_s15, 2  ;;  %p795_p11 = por %p105_p7, %p33_p0 }
   0xf   : > { %p799_p12 = por %p111_p8, %p39_p3  ;;  %s137_s26 = sand.u32 1, %s711_s14  }
  0x10   : > { %s958_s24 = scalar_select %p795_p11, 1, 0 }
  0x11   : > { %s959_s25 = scalar_select %p799_p12, 1, 0 }
  0x12   : > { %s542_s27 = sshll.u32 %s715_s15, 10  ;;  %s528_s28 = sshll.u32 %s137_s26, 6 }
  0x13   : > { %s808_s4 = scalar_lea.hbm %s950_s0, %s542_s27  ;;  %s141_s5 = scalar_lea.vmem [#allocation2], %s528_s28 }
  0x14   : > { %s148_s6 = sshll.u32 %s141_s5, 4  ;;  %p812_p13 = pnand %p579_p10, %p784_p5  ;;  %s816_s6 = int_to_ptr.vmem [resolvable:$true] %s148_s6 }
  0x15   : > { %s818_s8 = scalar_lea.sflag [#allocation3], %s137_s26  ;;  %s623_s9 = scalar_lea.hbm %s808_s4, 1024 }
  0x16   : > { %p624_p0 = scmp.ne.s32.totalorder %s808_s4, %s623_s9  ;;  %p625_p1 = pneg %p812_p13 }
  0x17   : > { %s628_s17 = scalar_lea.hbm %s950_s0, 2048  ;;  %p629_p4 = scmp.lt.s32.totalorder %s808_s4, %s950_s0 }
  0x18   : > { %p626_p2 = pnand %p625_p1, %p624_p0  ;;  %p630_p5 = scmp.lt.s32.totalorder %s628_s17, %s623_s9 }
  0x1a   : > { %p627_p3 = pneg %p626_p2  ;;  %p631_p7 = por %p630_p5, %p629_p4 }
  0x1c   : > { %p632_p8 = pnand %p631_p7, %p627_p3 }
  0x1e   : > { %635 = shalt.err (!%p632_p8)
}
  0x1f   : > { %s636_s22 = scalar_lea.vmem %s816_s6, 1024  ;;  %s717_s26 = smov [#allocation2]  }
  0x20   : > { %p637_p10 = scmp.ne.s32.totalorder %s816_s6, %s636_s22  ;;  %s641_s27 = sshll.u32 %s717_s26, 4  ;;  %s642_s27 = int_to_ptr.vmem [resolvable:$false] %s641_s27 }
  0x21   : > { %s643_s28 = scalar_lea.vmem %s642_s27, 2048  ;;  %p644_p2 = scmp.lt.s32.totalorder %s816_s6, %s642_s27 }
  0x22   : > { %p639_p9 = pnand %p637_p10, %p625_p1  ;;  %p645_p12 = scmp.lt.s32.totalorder %s643_s28, %s636_s22 }
  0x24   : > { %p640_p0 = pneg %p639_p9  ;;  %p646_p11 = por %p645_p12, %p644_p2 }
  0x26   : > { %p647_p6 = pnand %p646_p11, %p640_p0 }
  0x28   : > { %650 = shalt.err (!%p647_p6)
}
  0x29   : > { %s718_s29 = smov 256   ;;  %s719_s30 = smov 16  }
  0x2a   : > { %574 = dma.hbm_to_vmem [thread:$0]  (!%p812_p13), %s808_s4, 1024, %s816_s6, %s818_s8, %s718_s29, %s718_s29, %s719_s30  }
  0x2b   : > { %p531_p9 = scmp.ge.s32.totalorder %s715_s15, 1  ;;  %p156_p1 = scmp.lt.s32.totalorder %s715_s15, 3 }
  0x2d   : > { %p157_p3 = pnand %p531_p9, %p156_p1 }
  0x2e   : > { %s842_s5 = sand.u32 (!%p157_p3), 1, %s707_s13   ;;  %p961_p6 = scmp.ne.s32.totalorder (!%p157_p3), %s957_s23, 0 }
  0x2f   : > { %160 = sbr.rel (%p157_p3) target bundleno = 766 (0x2fe), region = 32  ;;  %s532_s9 = sshll.u32 (!%p157_p3), %s842_s5, 6 }
  0x30   : > { %s163_s10 = scalar_lea.sflag (!%p157_p3), [#allocation3], %s842_s5  ;;  %s166_s11 = scalar_lea.vmem (!%p157_p3), [#allocation2], %s532_s9 }
  0x34   : > { %694 = dma.done.wait (%p961_p6), %s163_s10, 1024  }
  0x35   : > { %696 = vsyncadd (%p961_p6), %s163_s10, 4294966272  ;;  %v852_v0 = vld [vmem:[%s166_s11] sm:$0xff]  ;;  %v854_v1 = vld [vmem:[%s166_s11 + $0x8] sm:$0xff]  ;;  %v720_v12 = vmov 0.0   ;;  %vm721_vm0 = vmmov 0   ;;  %v221_v17 = vlaneseq  ;;  %vm232_vm1 = vcmask 130112  }
  0x36   : > { %v856_v2 = vld [vmem:[%s166_s11 + $0x20] sm:$0xff]  ;;  %v197_v3 = vadd.f32 %v854_v1, %v852_v0  ;;  %v860_v4 = vld [vmem:[%s166_s11 + $0x28] sm:$0xff]  ;;  %v862_v5 = vld [vmem:[%s166_s11 + $0x10] sm:$0xff]  ;;  %551 = vmatprep.subr.mxu0 %v720_v12  ;;  %562 = vmatprep.subr.mxu1 %v720_v12  ;;  %vm239_vm2 = vcmask 195712   ;;  %vm246_vm3 = vcmask 261312   ;;  %vm248_vm4 = vcmask 261120  }
  0x37   : > { %v864_v6 = vld [vmem:[%s166_s11 + $0x18] sm:$0xff]  ;;  %v203_v7 = vadd.f32 %v860_v4, %v856_v2  ;;  %v868_v8 = vld [vmem:[%s166_s11 + $0x30] sm:$0xff]  ;;  %v214_v15 = vld [vmem:[%s951_s1 + $0x8] sm:$0xff]  ;;  %559 = vmatprep.mubr.msk.f32.mxu0 %vm721_vm0, %v720_v12  ;;  %564 = vmatprep.mubr.msk.f32.mxu1 %vm721_vm0, %v720_v12  ;;  %v222_v18 = vand.u32 127, %v221_v17  ;;  %v224_v19 = vshrl.u32 %v221_v17, 7  ;;  %vm323_vm5 = vcmask 64512  }
  0x38   : > { %v870_v9 = vld [vmem:[%s166_s11 + $0x38] sm:$0xff]  ;;  %198 = vadd.xlane.f32.xlu0 %v197_v3  ;;  %v200_v10 = vadd.f32 %v864_v6, %v862_v5  ;;  %v215_v14 = vld [vmem:[%s951_s1 + $0x10] sm:$0xff]  ;;  %v213_v16 = vld [vmem:[%s951_s1] sm:$0xff]  ;;  %s188_s27 = scalar_lea.vmem [#allocation5], %s532_s9  ;;  %s543_s29 = sshll.u32 %s766_s16, 10 }
  0x39   : > { %204 = vadd.xlane.f32.xlu1 %v203_v7  ;;  %v206_v11 = vadd.f32 %v870_v9, %v868_v8  ;;  %v216_v13 = vld [vmem:[%s951_s1 + $0x18] sm:$0xff]  ;;  %v227_v20 = vadd.s32 4294967288, %v222_v18  ;;  %v234_v22 = vadd.s32 4294967280, %v222_v18  ;;  %v241_v23 = vadd.s32 4294967272, %v222_v18  ;;  %v322_v42 = vld [vmem:[%s952_s2] sm:$0xff]  ;;  %s452_s28 = sshll.u32 %s188_s27, 4  ;;  %s905_s10 = scalar_lea.hbm %s953_s3, %s543_s29  ;;  %s900_s28 = int_to_ptr.vmem [resolvable:$true] %s452_s28 }
  0x3a   : > { %552 = vmatpush3.msra.mxu0 %v216_v13  ;;  %v225_v25 = vsub.s32 %v222_v18, %v224_v19  ;;  %563 = vmatpush3.msra.mxu1 %v322_v42  ;;  %v405_v51 = vsub.s32 0, %v224_v19  ;;  %s439_s16 = scalar_lea.sflag [#allocation4], %s842_s5  ;;  %s651_s11 = scalar_lea.vmem %s900_s28, 1024 }
  0x3b   : > { %553 = vmatprep.subr.mxu0 %v720_v12  ;;  %v230_v27 = vsub.s32 %v227_v20, %v224_v19  ;;  %v237_v28 = vsub.s32 %v234_v22, %v224_v19  ;;  %v244_v31 = vsub.s32 %v241_v23, %v224_v19  ;;  %p652_p11 = scmp.ne.s32.totalorder %s900_s28, %s651_s11  ;;  %p962_p12 = scmp.ne.s32.totalorder %s958_s24, 0 }
  0x3c   : > { %201 = vadd.xlane.f32.xlu0 %v200_v10  ;;  %554 = vmatpush3.msra.mxu0 %v215_v14  ;;  %s722_s23 = smov [#allocation5]  }
  0x3d   : > { %207 = vadd.xlane.f32.xlu1 %v206_v11  ;;  %555 = vmatprep.subr.mxu0 %v720_v12  ;;  %p653_p13 = pnand %p652_p11, %p962_p12  ;;  %s655_s4 = sshll.u32 %s722_s23, 4  ;;  %s656_s4 = int_to_ptr.vmem [resolvable:$false] %s655_s4 }
  0x3e   : > { %556 = vmatpush3.msra.mxu0 %v214_v15  ;;  %s657_s6 = scalar_lea.vmem %s656_s4, 2048  ;;  %p658_p5 = scmp.lt.s32.totalorder %s900_s28, %s656_s4 }
  0x3f   : > { %557 = vmatprep.subr.mxu0 %v720_v12  ;;  %p654_p4 = pneg %p653_p13  ;;  %p659_p7 = scmp.lt.s32.totalorder %s657_s6, %s651_s11 }
  0x40   : > { %558 = vmatpush3.msra.mxu0 %v213_v16 }
  0x41   : > { %p660_p8 = por %p659_p7, %p658_p5 }
  0x43   : > { %p661_p10 = pnand %p660_p8, %p654_p4 }
  0xc1   : > { %v199_v21 = vpop.xlane.xlu0 %198 }
  0xc2   : > { %v205_v24 = vpop.xlane.xlu1 %204  ;;  %v209_v26 = vmul.f32 0.00390625, %v199_v21 }
  0xc3   : > { %v211_v29 = vmul.f32 0.00390625, %v205_v24 }
  0xc4   : > { %v226_v35 = vrot.slane %v209_v26, %v225_v25 }
  0xc5   : > { %v202_v30 = vpop.xlane.xlu0 %201  ;;  %v238_v37 = vrot.slane %v211_v29, %v237_v28 }
  0xc6   : > { %v210_v32 = vmul.f32 0.00390625, %v202_v30  ;;  %v208_v33 = vpop.xlane.xlu1 %207 }
  0xc7   : > { %v212_v34 = vmul.f32 0.00390625, %v208_v33 }
  0xc8   : > { %v231_v36 = vrot.slane %v210_v32, %v230_v27 }
  0xc9   : > { %v245_v38 = vrot.slane %v212_v34, %v244_v31 }
  0xca   : > { %v233_v39 = vsel %vm232_vm1, %v231_v36, %v226_v35 }
  0xcb   : > { %v240_v40 = vsel %vm239_vm2, %v238_v37, %v233_v39 }
  0xcc   : > { %v247_v41 = vsel %vm246_vm3, %v245_v38, %v240_v40 }
  0xcd   : > { %560 = vmatmul.mubr.msk.f32.vlgmr.msra.gmra.mxu0 %vm248_vm4, %v247_v41 }
 0x18d   : > { %v317_v43 = vpop.f32.mrf.mxu0 }
 0x18e   : > { %v321_v44 = vmax.f32 %v317_v43, 0.0 }
 0x18f   : > { %v561_v45 = vpop.f32.mrf.mxu0 }
 0x190   : > { %565 = vmatmul.mubr.msk.f32.vlgmr.msra.gmra.mxu1 %vm323_vm5, %v321_v44 }
 0x250   : > { %v393_v46 = vpop.f32.mrf.mxu1 }
 0x251   : > { %v536_v47 = vmul.f32 -1.442695, %v393_v46 }
 0x252   : > { %v566_v48 = vpop.f32.mrf.mxu1 }
 0x253   : > { %619 = vpow2.f32 %v536_v47 }
 0x260   : > { %v620_v49 = vpop.eup %619 }
 0x261   : > { %v400_v50 = vadd.f32 1.0, %v620_v49 }
 0x263   : > { %621 = vrcp.f32 %v400_v50 }
 0x270   : > { %v622_v52 = vpop.eup %621 }
 0x271   : > { %v406_v53 = vrot.slane %v622_v52, %v405_v51 }
 0x273   : > { %412 = vbcast.lane.b32.xlu1 %v406_v53, 264  ;;  %408 = vbcast.lane.b32.xlu0 %v406_v53, 256 }
 0x277   : > { %416 = vbcast.lane.b32.xlu1 %v406_v53, 272 }
 0x27b   : > { %420 = vbcast.lane.b32.xlu1 %v406_v53, 280 }
 0x2e5   : > { %v413_v54 = vpop.permute.xlu1 %412  ;;  %v409_v55 = vpop.permute.xlu0 %408 }
 0x2e6   : > { %v424_v56 = vmul.f32 %v413_v54, %v862_v5  ;;  %v425_v57 = vmul.f32 %v413_v54, %v864_v6  ;;  %v422_v58 = vmul.f32 %v409_v55, %v852_v0  ;;  %v423_v59 = vmul.f32 %v409_v55, %v854_v1 }
 0x2e8   : > { %432 = vst [vmem:[%s188_s27 + $0x10] sm:$0xff] %v424_v56  ;;  %433 = vst [vmem:[%s188_s27 + $0x18] sm:$0xff] %v425_v57 }
 0x2e9   : > { %430 = vst [vmem:[%s188_s27] sm:$0xff] %v422_v58  ;;  %431 = vst [vmem:[%s188_s27 + $0x8] sm:$0xff] %v423_v59  ;;  %v417_v60 = vpop.permute.xlu1 %416 }
 0x2ea   : > { %v426_v61 = vmul.f32 %v417_v60, %v856_v2  ;;  %v427_v62 = vmul.f32 %v417_v60, %v860_v4 }
 0x2ec   : > { %434 = vst [vmem:[%s188_s27 + $0x20] sm:$0xff] %v426_v61  ;;  %435 = vst [vmem:[%s188_s27 + $0x28] sm:$0xff] %v427_v62 }
 0x2ed   : > { %v421_v63 = vpop.permute.xlu1 %420 }
 0x2ee   : > { %v428_v0 = vmul.f32 %v421_v63, %v868_v8  ;;  %v429_v1 = vmul.f32 %v421_v63, %v870_v9 }
 0x2f0   : > { %436 = vst [vmem:[%s188_s27 + $0x30] sm:$0xff] %v428_v0  ;;  %437 = vst [vmem:[%s188_s27 + $0x38] sm:$0xff] %v429_v1 }
 0x2f1   : > { %664 = shalt.err (!%p661_p10)
}
 0x2f2   : > { %s665_s7 = scalar_lea.hbm %s905_s10, 1024  ;;  %s669_s19 = scalar_lea.hbm %s953_s3, 2048 }
 0x2f3   : > { %p666_p0 = scmp.ne.s32.totalorder %s905_s10, %s665_s7  ;;  %p670_p1 = scmp.lt.s32.totalorder %s905_s10, %s953_s3 }
 0x2f4   : > { %p671_p3 = scmp.lt.s32.totalorder %s669_s19, %s665_s7 }
 0x2f5   : > { %p667_p2 = pnand %p666_p0, %p962_p12 }
 0x2f6   : > { %p672_p6 = por %p671_p3, %p670_p1 }
 0x2f7   : > { %p668_p9 = pneg %p667_p2 }
 0x2f9   : > { %p673_p11 = pnand %p672_p6, %p668_p9 }
 0x2fb   : > { %676 = shalt.err (!%p673_p11)
}
 0x2fc   : > { %s723_s26 = smov 256   ;;  %s724_s27 = smov 16  }
 0x2fd   : > { %569 = dma.vmem_to_hbm [thread:$0]  (%p962_p12), %s900_s28, 1024, %s905_s10, %s439_s16, %s723_s26, %s723_s26, %s724_s27  }
 0x2fe PF: > { %s467_s29 = sand.u32 1, %s703_s12   ;;  %p963_p13 = scmp.ne.s32.totalorder %s959_s25, 0 }
 0x2ff   : > { %p964_p4 = scmp.ge.s32.totalorder %s715_s15, 2  ;;  %s468_s30 = scalar_lea.sflag [#allocation4], %s467_s29 }
 0x301   : > { %p576_p5 = pnand %p964_p4, %p963_p13 }
 0x303   : > { %p577_p7 = pneg %p576_p5 }
 0x305   : > { %698 = dma.done.wait (%p577_p7), %s468_s30, 1024  }
 0x306   : > { %700 = vsyncadd (%p577_p7), %s468_s30, 4294966272  ;;  %p16_p8 = scmp.ge.s32.totalorder %s770_s18, 4   ;;  %s965_s12 = smov %s707_s13 }
 0x307   : > { %s966_s13 = smov %s711_s14  ;;  %s967_s14 = smov %s782_s21 }
 0x308   : > { %s968_s15 = smov %s770_s18  ;;  %18 = sbr.rel (!%p16_p8) target bundleno = 5 (0x5), region = 77 }
 0x30d   :  { %473 = vsyncpa [#allocation3], 1 }
 0x30e   :  { %475 = vsyncpa [#allocation3 + $0x1], 1 }
 0x30f   :  { %476 = vsyncpa [#allocation4], 1 }
 0x310   :  { %478 = vsyncpa [#allocation4 + $0x1], 1 }

</bundles_post_ra>
